<compile_context>
chip_gen: v6e
topology: v6e:2x2x1
jax: 0.10.0
libtpu: 0.0.40
codegen_flags: <defaults>
</compile_context>

<pallas_src>
import numpy as np

import jax
import jax.numpy as jnp
from jax.experimental import pallas as pl
from jax.experimental.pallas import tpu as pltpu


# ------------------------------ Pallas kernel ------------------------------ #
def _fused_forward_kernel(x_ref,
                          m0_ref, b0_ref, m1_ref, b1_ref,
                          m2_ref, b2_ref, m3_ref, b3_ref,
                          mfc_ref, bfc_ref,
                          o_ref,
                          s0, s1, s2):
    """Whole per-sample forward; the grid iterates over the batch.

    x_ref : (W0, C0*H0)            input sample, rows = w, cols = c*H0 + h
    m_l   : (3*Cin*Hin, Cout*Hout) packed conv matrix (kw-major rows)
    b_l   : (1, Cout*Hout)         conv bias row
    mfc   : (W_last, 32*H_last, out)  packed final Linear (flatten order folded)
    bfc   : (1, out)
    o_ref : (1, out)
    s0..2 : VMEM scratch holding conv0..2 outputs (next layer re-reads them
            with sublane-strided loads).
    """
    def conv(in_ref, m_ref, b_ref, w_out):
        even = in_ref[pl.ds(0, w_out, stride=2), :]       # kw=1 taps: rows 0,2,..
        odd = in_ref[pl.ds(1, w_out, stride=2), :]        # kw=2 taps: rows 1,3,..
        left = jnp.concatenate(                           # kw=0 taps: left zero pad
            [jnp.zeros_like(odd[:1]), odd[:-1]], axis=0)
        bcat = jnp.concatenate([left, even, odd], axis=-1)  # (w_out, 3*Cin*Hin)
        z = jnp.dot(bcat, m_ref[...], preferred_element_type=jnp.float32)
        return jnp.maximum(z + b_ref[...], 0.0)           # bias + ReLU

    s0[...] = conv(x_ref, m0_ref, b0_ref, s0.shape[0])
    s1[...] = conv(s0, m1_ref, b1_ref, s1.shape[0])
    s2[...] = conv(s1, m2_ref, b2_ref, s2.shape[0])
    a = conv(s2, m3_ref, b3_ref, mfc_ref.shape[0])        # (W_last, 32*H_last)

    # Flatten (+ Dropout(0.01): identity at inference) + Linear.
    out = bfc_ref[...]
    for w in range(mfc_ref.shape[0]):                     # W_last tiny (=2)
        out = out + jnp.dot(a[w:w + 1, :], mfc_ref[w],
                            preferred_element_type=jnp.float32)
    o_ref[...] = out


# --------------------------- One-time weight packing ------------------------ #
def pack_model(params, input_shape, outputs_count):
    """Repack PyTorch-layout params into per-sample constant matrices.

    Conv l:  M_l[kw*Cin*Hin + ci*Hin + h, co*Hout + oh] = w_l[co, ci, kh, kw]
             with h = 2*oh + kh - 1 (zero padding rows dropped), plus a bias
             row (1, Cout*Hout).
    Linear:  Mfc[w, c*H_last + h, j] = fc_w[j, (c*H_last + h)*W_last + w]
             (NCHW view(N,-1) flatten order folded in), plus bias (1, out).
    """
    C0, H0, W0 = input_shape
    conv_defs = [(C0, 8), (8, 8), (8, 16), (16, 32)]
    packed = []
    H, W = H0, W0
    for i, (cin, cout) in enumerate(conv_defs):
        w = np.asarray(params[f"conv{i}_w"], np.float32)   # (cout, cin, 3, 3)
        b = np.asarray(params[f"conv{i}_b"], np.float32)   # (cout,)
        Ho, Wo = H // 2, W // 2
        k_in, k_out = cin * H, cout * Ho
        M = np.zeros((3 * k_in, k_out), np.float32)
        for kw in range(3):
            for kh in range(3):
                for oh in range(Ho):
                    h = 2 * oh + kh - 1
                    if 0 <= h < H:
                        rows = kw * k_in + np.arange(cin) * H + h
                        cols = np.arange(cout) * Ho + oh
                        M[np.ix_(rows, cols)] += w[:, :, kh, kw].T
        bias_row = np.repeat(b, Ho)[None, :].astype(np.float32)
        packed += [jnp.asarray(M), jnp.asarray(bias_row)]
        H, W = Ho, Wo

    c_last = conv_defs[-1][1]
    fc_w = np.asarray(params["fc_w"], np.float32)           # (out, c_last*H*W)
    fc_b = np.asarray(params["fc_b"], np.float32)
    Mfc = fc_w.T.reshape(c_last * H, W, outputs_count).transpose(1, 0, 2)
    packed += [jnp.asarray(np.ascontiguousarray(Mfc)),
               jnp.asarray(fc_b[None, :].astype(np.float32))]
    return packed


# ------------------------------ Parameters --------------------------------- #
def xavier_uniform(key, shape, fan_in, fan_out):
    bound = jnp.sqrt(6.0 / (fan_in + fan_out))
    return jax.random.uniform(key, shape, jnp.float32, -bound, bound)


def init_params(key, input_shape, outputs_count):
    C, H, W = input_shape
    ratio = 2 ** 4
    fc_inputs_count = (W // ratio) * (H // ratio)
    conv_defs = [(C, 8), (8, 8), (8, 16), (16, 32)]
    params = {}
    keys = jax.random.split(key, 2 * len(conv_defs) + 2)
    for i, (cin, cout) in enumerate(conv_defs):
        kw_key, kb_key = keys[2 * i], keys[2 * i + 1]
        fan_in, fan_out = cin * 9, cout * 9
        params[f"conv{i}_w"] = xavier_uniform(kw_key, (cout, cin, 3, 3),
                                              fan_in, fan_out)
        bb = 1.0 / jnp.sqrt(fan_in)
        params[f"conv{i}_b"] = jax.random.uniform(kb_key, (cout,),
                                                  jnp.float32, -bb, bb)
    in_feat = 32 * fc_inputs_count
    params["fc_w"] = xavier_uniform(keys[-2], (outputs_count, in_feat),
                                    in_feat, outputs_count)
    bb = 1.0 / jnp.sqrt(in_feat)
    params["fc_b"] = jax.random.uniform(keys[-1], (outputs_count,),
                                        jnp.float32, -bb, bb)
    return params


# ------------------------------ Forward pass -------------------------------- #
def model_forward(packed, x_nchw):
    N, C, H, W = x_nchw.shape
    m0, b0, m1, b1, m2, b2, m3, b3, mfc, bfc = packed
    out_count = bfc.shape[1]

    # Tiny relayout of the NCHW input to per-sample (W, C*H) slabs.
    x_t = x_nchw.transpose(0, 3, 1, 2).reshape(N, W, C * H)

    def _const_spec(arr):
        zeros = (0,) * arr.ndim
        return pl.BlockSpec(arr.shape, lambda n: zeros)   # resident, no re-DMA

    weight_specs = [_const_spec(a) for a in packed]

    scratch = [pltpu.VMEM((W // 2, b0.shape[1]), jnp.float32),
               pltpu.VMEM((W // 4, b1.shape[1]), jnp.float32),
               pltpu.VMEM((W // 8, b2.shape[1]), jnp.float32)]

    # Advisory cost estimate (the op is tiny and latency bound).
    flops, wl = 0, W
    for m in (m0, m1, m2, m3):
        wl //= 2
        flops += 2 * wl * m.shape[0] * m.shape[1]
    flops += 2 * mfc.shape[0] * mfc.shape[1] * mfc.shape[2]
    flops *= N
    bytes_accessed = (x_t.size + sum(int(p.size) for p in packed)
                      + N * out_count) * 4

    out = pl.pallas_call(
        _fused_forward_kernel,
        grid=(N,),
        out_shape=jax.ShapeDtypeStruct((N, 1, out_count), jnp.float32),
        in_specs=[pl.BlockSpec((None, W, C * H), lambda n: (n, 0, 0))]
                 + weight_specs,
        out_specs=pl.BlockSpec((None, 1, out_count), lambda n: (n, 0, 0)),
        scratch_shapes=scratch,
        compiler_params=pltpu.CompilerParams(
            dimension_semantics=("parallel",)),
        cost_estimate=pl.CostEstimate(flops=int(flops), transcendentals=0,
                                      bytes_accessed=int(bytes_accessed)),
    )(x_t, *packed)
    return out.reshape(N, out_count)


# --------------------------- Plain-XLA reference ---------------------------- #
def reference_forward(params, x):
    y = x
    for i in range(4):
        w = params[f"conv{i}_w"]
        b = params[f"conv{i}_b"]
        y = jax.lax.conv_general_dilated(
            y, w, window_strides=(2, 2), padding=((1, 1), (1, 1)),
            dimension_numbers=("NCHW", "OIHW", "NCHW"),
            precision=jax.lax.Precision.HIGHEST)
        y = jnp.maximum(y + b[None, :, None, None], 0.0)
    y = y.reshape(y.shape[0], -1)
    return jnp.dot(y, params["fc_w"].T,
                   precision=jax.lax.Precision.HIGHEST) + params["fc_b"]


# ---------------------------------- Main ------------------------------------ #
if __name__ == "__main__":
    input_shape = (3, 32, 32)   # (C, H, W) -- H, W divisible by 16
    outputs_count = 10
    batch = 2

    key = jax.random.PRNGKey(0)
    pkey, xkey = jax.random.split(key)
    params = init_params(pkey, input_shape, outputs_count)
    x = jax.random.normal(xkey, (batch,) + input_shape, jnp.float32)  # NCHW

    packed = pack_model(params, input_shape, batch and outputs_count)

    fwd = jax.jit(model_forward)
    y = fwd(packed, x)
    jax.block_until_ready(y)
    assert y.shape == (batch, outputs_count), y.shape

    # Numerical sanity check against a plain-XLA reference (all f32).
    y_ref = reference_forward(params, x)
    err = float(jnp.max(jnp.abs(y - y_ref)))
    assert err < 1e-2, f"max abs error {err}"

    print("KERNEL_OK")
</pallas_src>

<mosaic_0001>
module attributes {stable_mosaic.version = 11 : i64} {
  func.func @_fused_forward_kernel(%arg0: i32, %arg1: memref<1x32x96xf32, #tpu.memory_space<vmem>>, %arg2: memref<288x128xf32, #tpu.memory_space<vmem>>, %arg3: memref<1x128xf32, #tpu.memory_space<vmem>>, %arg4: memref<384x64xf32, #tpu.memory_space<vmem>>, %arg5: memref<1x64xf32, #tpu.memory_space<vmem>>, %arg6: memref<192x64xf32, #tpu.memory_space<vmem>>, %arg7: memref<1x64xf32, #tpu.memory_space<vmem>>, %arg8: memref<192x64xf32, #tpu.memory_space<vmem>>, %arg9: memref<1x64xf32, #tpu.memory_space<vmem>>, %arg10: memref<2x64x10xf32, #tpu.memory_space<vmem>>, %arg11: memref<1x10xf32, #tpu.memory_space<vmem>>, %arg12: memref<1x1x10xf32, #tpu.memory_space<vmem>>, %arg13: memref<16x128xf32, #tpu.memory_space<vmem>>, %arg14: memref<8x64xf32, #tpu.memory_space<vmem>>, %arg15: memref<4x64xf32, #tpu.memory_space<vmem>>) attributes {dimension_semantics = [#tpu.dimension_semantics<parallel>], iteration_bounds = array<i64: 2>, scalar_prefetch = 0 : i64, scratch_operands = 3 : i64, tpu.core_type = #tpu.core_type<tc>, window_params = [{transform_indices = @transform_0, window_bounds = array<i64: 1, 32, 96>}, {pipeline_mode = #tpu.pipeline_mode<synchronous>, transform_indices = @transform_1, window_bounds = array<i64: 288, 128>}, {pipeline_mode = #tpu.pipeline_mode<synchronous>, transform_indices = @transform_2, window_bounds = array<i64: 1, 128>}, {pipeline_mode = #tpu.pipeline_mode<synchronous>, transform_indices = @transform_3, window_bounds = array<i64: 384, 64>}, {pipeline_mode = #tpu.pipeline_mode<synchronous>, transform_indices = @transform_4, window_bounds = array<i64: 1, 64>}, {pipeline_mode = #tpu.pipeline_mode<synchronous>, transform_indices = @transform_5, window_bounds = array<i64: 192, 64>}, {pipeline_mode = #tpu.pipeline_mode<synchronous>, transform_indices = @transform_6, window_bounds = array<i64: 1, 64>}, {pipeline_mode = #tpu.pipeline_mode<synchronous>, transform_indices = @transform_7, window_bounds = array<i64: 192, 64>}, {pipeline_mode = #tpu.pipeline_mode<synchronous>, transform_indices = @transform_8, window_bounds = array<i64: 1, 64>}, {pipeline_mode = #tpu.pipeline_mode<synchronous>, transform_indices = @transform_9, window_bounds = array<i64: 2, 64, 10>}, {pipeline_mode = #tpu.pipeline_mode<synchronous>, transform_indices = @transform_10, window_bounds = array<i64: 1, 10>}, {transform_indices = @transform_11, window_bounds = array<i64: 1, 1, 10>}]} {
    %c0 = arith.constant 0 : index
    %c0_0 = arith.constant 0 : index
    %c0_1 = arith.constant 0 : index
    %0 = tpu.strided_load %arg1[%c0, %c0_0, %c0_1] {strides = array<i32: 1, 2, 1>} : memref<1x32x96xf32, #tpu.memory_space<vmem>>, vector<1x16x96xf32>
    %1 = vector.shape_cast %0 : vector<1x16x96xf32> to vector<16x96xf32>
    %c0_2 = arith.constant 0 : index
    %c1 = arith.constant 1 : index
    %c0_3 = arith.constant 0 : index
    %2 = tpu.strided_load %arg1[%c0_2, %c1, %c0_3] {strides = array<i32: 1, 2, 1>} : memref<1x32x96xf32, #tpu.memory_space<vmem>>, vector<1x16x96xf32>
    %3 = vector.shape_cast %2 : vector<1x16x96xf32> to vector<16x96xf32>
    %cst = arith.constant 0.000000e+00 : f32
    %4 = vector.broadcast %cst : f32 to vector<1x96xf32>
    %5 = vector.extract_strided_slice %3 {offsets = [0, 0], sizes = [15, 96], strides = [1, 1]} : vector<16x96xf32> to vector<15x96xf32>
    %6 = tpu.concatenate %4, %5 in 0 : vector<1x96xf32>, vector<15x96xf32> -> vector<16x96xf32>
    %7 = tpu.concatenate %6, %1, %3 in 1 : vector<16x96xf32>, vector<16x96xf32>, vector<16x96xf32> -> vector<16x288xf32>
    %c0_4 = arith.constant 0 : index
    %c0_5 = arith.constant 0 : index
    %8 = vector.load %arg2[%c0_4, %c0_5] : memref<288x128xf32, #tpu.memory_space<vmem>>, vector<288x128xf32>
    %cst_6 = arith.constant dense<0.000000e+00> : vector<16x128xf32>
    %9 = tpu.matmul %7, %8, %cst_6 {dimension_numbers = #tpu.dot_dimension_numbers<[1], [0], [0], [1], [0, 0, 1, 1], [], []>} : vector<16x288xf32>, vector<288x128xf32>, vector<16x128xf32> -> vector<16x128xf32>
    %c0_7 = arith.constant 0 : index
    %c0_8 = arith.constant 0 : index
    %10 = vector.load %arg3[%c0_7, %c0_8] : memref<1x128xf32, #tpu.memory_space<vmem>>, vector<1x128xf32>
    %11 = vector.broadcast %10 : vector<1x128xf32> to vector<16x128xf32>
    %12 = arith.addf %9, %11 : vector<16x128xf32>
    %cst_9 = arith.constant 0.000000e+00 : f32
    %13 = vector.broadcast %cst_9 : f32 to vector<16x128xf32>
    %14 = arith.maximumf %12, %13 : vector<16x128xf32>
    %c0_10 = arith.constant 0 : index
    %c0_11 = arith.constant 0 : index
    %15 = vector.load %arg13[%c0_10, %c0_11] : memref<16x128xf32, #tpu.memory_space<vmem>>, vector<16x128xf32>
    tpu.vector_store %arg13[%c0_10, %c0_11], %14 {strides = array<i32>} : memref<16x128xf32, #tpu.memory_space<vmem>>, vector<16x128xf32>,
    %c0_12 = arith.constant 0 : index
    %c0_13 = arith.constant 0 : index
    %16 = tpu.strided_load %arg13[%c0_12, %c0_13] {strides = array<i32: 2, 1>} : memref<16x128xf32, #tpu.memory_space<vmem>>, vector<8x128xf32>
    %c1_14 = arith.constant 1 : index
    %c0_15 = arith.constant 0 : index
    %17 = tpu.strided_load %arg13[%c1_14, %c0_15] {strides = array<i32: 2, 1>} : memref<16x128xf32, #tpu.memory_space<vmem>>, vector<8x128xf32>
    %cst_16 = arith.constant 0.000000e+00 : f32
    %18 = vector.broadcast %cst_16 : f32 to vector<1x128xf32>
    %19 = vector.extract_strided_slice %17 {offsets = [0, 0], sizes = [7, 128], strides = [1, 1]} : vector<8x128xf32> to vector<7x128xf32>
    %20 = tpu.concatenate %18, %19 in 0 : vector<1x128xf32>, vector<7x128xf32> -> vector<8x128xf32>
    %21 = tpu.concatenate %20, %16, %17 in 1 : vector<8x128xf32>, vector<8x128xf32>, vector<8x128xf32> -> vector<8x384xf32>
    %c0_17 = arith.constant 0 : index
    %c0_18 = arith.constant 0 : index
    %22 = vector.load %arg4[%c0_17, %c0_18] : memref<384x64xf32, #tpu.memory_space<vmem>>, vector<384x64xf32>
    %cst_19 = arith.constant dense<0.000000e+00> : vector<8x64xf32>
    %23 = tpu.matmul %21, %22, %cst_19 {dimension_numbers = #tpu.dot_dimension_numbers<[1], [0], [0], [1], [0, 0, 1, 1], [], []>} : vector<8x384xf32>, vector<384x64xf32>, vector<8x64xf32> -> vector<8x64xf32>
    %c0_20 = arith.constant 0 : index
    %c0_21 = arith.constant 0 : index
    %24 = vector.load %arg5[%c0_20, %c0_21] : memref<1x64xf32, #tpu.memory_space<vmem>>, vector<1x64xf32>
    %25 = vector.broadcast %24 : vector<1x64xf32> to vector<8x64xf32>
    %26 = arith.addf %23, %25 : vector<8x64xf32>
    %cst_22 = arith.constant 0.000000e+00 : f32
    %27 = vector.broadcast %cst_22 : f32 to vector<8x64xf32>
    %28 = arith.maximumf %26, %27 : vector<8x64xf32>
    %c0_23 = arith.constant 0 : index
    %c0_24 = arith.constant 0 : index
    %29 = vector.load %arg14[%c0_23, %c0_24] : memref<8x64xf32, #tpu.memory_space<vmem>>, vector<8x64xf32>
    tpu.vector_store %arg14[%c0_23, %c0_24], %28 {strides = array<i32>} : memref<8x64xf32, #tpu.memory_space<vmem>>, vector<8x64xf32>,
    %c0_25 = arith.constant 0 : index
    %c0_26 = arith.constant 0 : index
    %30 = tpu.strided_load %arg14[%c0_25, %c0_26] {strides = array<i32: 2, 1>} : memref<8x64xf32, #tpu.memory_space<vmem>>, vector<4x64xf32>
    %c1_27 = arith.constant 1 : index
    %c0_28 = arith.constant 0 : index
    %31 = tpu.strided_load %arg14[%c1_27, %c0_28] {strides = array<i32: 2, 1>} : memref<8x64xf32, #tpu.memory_space<vmem>>, vector<4x64xf32>
    %cst_29 = arith.constant 0.000000e+00 : f32
    %32 = vector.broadcast %cst_29 : f32 to vector<1x64xf32>
    %33 = vector.extract_strided_slice %31 {offsets = [0, 0], sizes = [3, 64], strides = [1, 1]} : vector<4x64xf32> to vector<3x64xf32>
    %34 = tpu.concatenate %32, %33 in 0 : vector<1x64xf32>, vector<3x64xf32> -> vector<4x64xf32>
    %35 = tpu.concatenate %34, %30, %31 in 1 : vector<4x64xf32>, vector<4x64xf32>, vector<4x64xf32> -> vector<4x192xf32>
    %c0_30 = arith.constant 0 : index
    %c0_31 = arith.constant 0 : index
    %36 = vector.load %arg6[%c0_30, %c0_31] : memref<192x64xf32, #tpu.memory_space<vmem>>, vector<192x64xf32>
    %cst_32 = arith.constant dense<0.000000e+00> : vector<4x64xf32>
    %37 = tpu.matmul %35, %36, %cst_32 {dimension_numbers = #tpu.dot_dimension_numbers<[1], [0], [0], [1], [0, 0, 1, 1], [], []>} : vector<4x192xf32>, vector<192x64xf32>, vector<4x64xf32> -> vector<4x64xf32>
    %c0_33 = arith.constant 0 : index
    %c0_34 = arith.constant 0 : index
    %38 = vector.load %arg7[%c0_33, %c0_34] : memref<1x64xf32, #tpu.memory_space<vmem>>, vector<1x64xf32>
    %39 = vector.broadcast %38 : vector<1x64xf32> to vector<4x64xf32>
    %40 = arith.addf %37, %39 : vector<4x64xf32>
    %cst_35 = arith.constant 0.000000e+00 : f32
    %41 = vector.broadcast %cst_35 : f32 to vector<4x64xf32>
    %42 = arith.maximumf %40, %41 : vector<4x64xf32>
    %c0_36 = arith.constant 0 : index
    %c0_37 = arith.constant 0 : index
    %43 = vector.load %arg15[%c0_36, %c0_37] : memref<4x64xf32, #tpu.memory_space<vmem>>, vector<4x64xf32>
    tpu.vector_store %arg15[%c0_36, %c0_37], %42 {strides = array<i32>} : memref<4x64xf32, #tpu.memory_space<vmem>>, vector<4x64xf32>,
    %c0_38 = arith.constant 0 : index
    %c0_39 = arith.constant 0 : index
    %44 = tpu.strided_load %arg15[%c0_38, %c0_39] {strides = array<i32: 2, 1>} : memref<4x64xf32, #tpu.memory_space<vmem>>, vector<2x64xf32>
    %c1_40 = arith.constant 1 : index
    %c0_41 = arith.constant 0 : index
    %45 = tpu.strided_load %arg15[%c1_40, %c0_41] {strides = array<i32: 2, 1>} : memref<4x64xf32, #tpu.memory_space<vmem>>, vector<2x64xf32>
    %cst_42 = arith.constant 0.000000e+00 : f32
    %46 = vector.broadcast %cst_42 : f32 to vector<1x64xf32>
    %47 = vector.extract_strided_slice %45 {offsets = [0, 0], sizes = [1, 64], strides = [1, 1]} : vector<2x64xf32> to vector<1x64xf32>
    %48 = tpu.concatenate %46, %47 in 0 : vector<1x64xf32>, vector<1x64xf32> -> vector<2x64xf32>
    %49 = tpu.concatenate %48, %44, %45 in 1 : vector<2x64xf32>, vector<2x64xf32>, vector<2x64xf32> -> vector<2x192xf32>
    %c0_43 = arith.constant 0 : index
    %c0_44 = arith.constant 0 : index
    %50 = vector.load %arg8[%c0_43, %c0_44] : memref<192x64xf32, #tpu.memory_space<vmem>>, vector<192x64xf32>
    %cst_45 = arith.constant dense<0.000000e+00> : vector<2x64xf32>
    %51 = tpu.matmul %49, %50, %cst_45 {dimension_numbers = #tpu.dot_dimension_numbers<[1], [0], [0], [1], [0, 0, 1, 1], [], []>} : vector<2x192xf32>, vector<192x64xf32>, vector<2x64xf32> -> vector<2x64xf32>
    %c0_46 = arith.constant 0 : index
    %c0_47 = arith.constant 0 : index
    %52 = vector.load %arg9[%c0_46, %c0_47] : memref<1x64xf32, #tpu.memory_space<vmem>>, vector<1x64xf32>
    %53 = vector.broadcast %52 : vector<1x64xf32> to vector<2x64xf32>
    %54 = arith.addf %51, %53 : vector<2x64xf32>
    %cst_48 = arith.constant 0.000000e+00 : f32
    %55 = vector.broadcast %cst_48 : f32 to vector<2x64xf32>
    %56 = arith.maximumf %54, %55 : vector<2x64xf32>
    %c0_49 = arith.constant 0 : index
    %c0_50 = arith.constant 0 : index
    %57 = vector.load %arg11[%c0_49, %c0_50] : memref<1x10xf32, #tpu.memory_space<vmem>>, vector<1x10xf32>
    %58 = vector.extract_strided_slice %56 {offsets = [0, 0], sizes = [1, 64], strides = [1, 1]} : vector<2x64xf32> to vector<1x64xf32>
    %c0_51 = arith.constant 0 : index
    %c0_52 = arith.constant 0 : index
    %c0_53 = arith.constant 0 : index
    %59 = vector.load %arg10[%c0_51, %c0_52, %c0_53] : memref<2x64x10xf32, #tpu.memory_space<vmem>>, vector<1x64x10xf32>
    %60 = vector.shape_cast %59 : vector<1x64x10xf32> to vector<64x10xf32>
    %cst_54 = arith.constant dense<0.000000e+00> : vector<1x10xf32>
    %61 = tpu.matmul %58, %60, %cst_54 {dimension_numbers = #tpu.dot_dimension_numbers<[1], [0], [0], [1], [0, 0, 1, 1], [], []>} : vector<1x64xf32>, vector<64x10xf32>, vector<1x10xf32> -> vector<1x10xf32>
    %62 = arith.addf %57, %61 : vector<1x10xf32>
    %63 = vector.extract_strided_slice %56 {offsets = [1, 0], sizes = [1, 64], strides = [1, 1]} : vector<2x64xf32> to vector<1x64xf32>
    %c1_55 = arith.constant 1 : index
    %c0_56 = arith.constant 0 : index
    %c0_57 = arith.constant 0 : index
    %64 = vector.load %arg10[%c1_55, %c0_56, %c0_57] : memref<2x64x10xf32, #tpu.memory_space<vmem>>, vector<1x64x10xf32>
    %65 = vector.shape_cast %64 : vector<1x64x10xf32> to vector<64x10xf32>
    %cst_58 = arith.constant dense<0.000000e+00> : vector<1x10xf32>
    %66 = tpu.matmul %63, %65, %cst_58 {dimension_numbers = #tpu.dot_dimension_numbers<[1], [0], [0], [1], [0, 0, 1, 1], [], []>} : vector<1x64xf32>, vector<64x10xf32>, vector<1x10xf32> -> vector<1x10xf32>
    %67 = arith.addf %62, %66 : vector<1x10xf32>
    %c0_59 = arith.constant 0 : index
    %c0_60 = arith.constant 0 : index
    %c0_61 = arith.constant 0 : index
    %68 = vector.load %arg12[%c0_59, %c0_60, %c0_61] : memref<1x1x10xf32, #tpu.memory_space<vmem>>, vector<1x1x10xf32>
    %69 = vector.shape_cast %68 : vector<1x1x10xf32> to vector<1x10xf32>
    %70 = vector.shape_cast %67 : vector<1x10xf32> to vector<1x1x10xf32>
    tpu.vector_store %arg12[%c0_59, %c0_60, %c0_61], %70 {strides = array<i32>} : memref<1x1x10xf32, #tpu.memory_space<vmem>>, vector<1x1x10xf32>,
    return
  }
  func.func @transform_0(%arg0: i32) -> (i32, i32, i32) {
    %c0_i32 = arith.constant 0 : i32
    %c0_i32_0 = arith.constant 0 : i32
    %c0_i32_1 = arith.constant 0 : i32
    return %arg0, %c0_i32, %c0_i32_0 : i32, i32, i32
  }
  func.func @transform_1(%arg0: i32) -> (i32, i32) {
    %c0_i32 = arith.constant 0 : i32
    %c0_i32_0 = arith.constant 0 : i32
    %c0_i32_1 = arith.constant 0 : i32
    return %c0_i32, %c0_i32_0 : i32, i32
  }
  func.func @transform_2(%arg0: i32) -> (i32, i32) {
    %c0_i32 = arith.constant 0 : i32
    %c0_i32_0 = arith.constant 0 : i32
    %c0_i32_1 = arith.constant 0 : i32
    return %c0_i32, %c0_i32_0 : i32, i32
  }
  func.func @transform_3(%arg0: i32) -> (i32, i32) {
    %c0_i32 = arith.constant 0 : i32
    %c0_i32_0 = arith.constant 0 : i32
    %c0_i32_1 = arith.constant 0 : i32
    return %c0_i32, %c0_i32_0 : i32, i32
  }
  func.func @transform_4(%arg0: i32) -> (i32, i32) {
    %c0_i32 = arith.constant 0 : i32
    %c0_i32_0 = arith.constant 0 : i32
    %c0_i32_1 = arith.constant 0 : i32
    return %c0_i32, %c0_i32_0 : i32, i32
  }
  func.func @transform_5(%arg0: i32) -> (i32, i32) {
    %c0_i32 = arith.constant 0 : i32
    %c0_i32_0 = arith.constant 0 : i32
    %c0_i32_1 = arith.constant 0 : i32
    return %c0_i32, %c0_i32_0 : i32, i32
  }
  func.func @transform_6(%arg0: i32) -> (i32, i32) {
    %c0_i32 = arith.constant 0 : i32
    %c0_i32_0 = arith.constant 0 : i32
    %c0_i32_1 = arith.constant 0 : i32
    return %c0_i32, %c0_i32_0 : i32, i32
  }
  func.func @transform_7(%arg0: i32) -> (i32, i32) {
    %c0_i32 = arith.constant 0 : i32
    %c0_i32_0 = arith.constant 0 : i32
    %c0_i32_1 = arith.constant 0 : i32
    return %c0_i32, %c0_i32_0 : i32, i32
  }
  func.func @transform_8(%arg0: i32) -> (i32, i32) {
    %c0_i32 = arith.constant 0 : i32
    %c0_i32_0 = arith.constant 0 : i32
    %c0_i32_1 = arith.constant 0 : i32
    return %c0_i32, %c0_i32_0 : i32, i32
  }
  func.func @transform_9(%arg0: i32) -> (i32, i32, i32) {
    %c0_i32 = arith.constant 0 : i32
    %c0_i32_0 = arith.constant 0 : i32
    %c0_i32_1 = arith.constant 0 : i32
    %c0_i32_2 = arith.constant 0 : i32
    return %c0_i32, %c0_i32_0, %c0_i32_1 : i32, i32, i32
  }
  func.func @transform_10(%arg0: i32) -> (i32, i32) {
    %c0_i32 = arith.constant 0 : i32
    %c0_i32_0 = arith.constant 0 : i32
    %c0_i32_1 = arith.constant 0 : i32
    return %c0_i32, %c0_i32_0 : i32, i32
  }
  func.func @transform_11(%arg0: i32) -> (i32, i32, i32) {
    %c0_i32 = arith.constant 0 : i32
    %c0_i32_0 = arith.constant 0 : i32
    %c0_i32_1 = arith.constant 0 : i32
    return %arg0, %c0_i32, %c0_i32_0 : i32, i32, i32
  }
}

</mosaic_0001>

<bundles_post_ra>
// kernel: model_forward.1
= control target key start
LH: loop header
LB: loop body
LE: loop exit
PB: predicated region body
PF: predicated region fallthrough
CT: control target
= control target key end

     0   :  { %16 = vsyncpa [#allocation6], 0  ;;  %s2366_s0 = inlined_call_operand.vmem [shape: f32[2,32,96], index: 0, kind: input, shape index: {}]   ;;  %s2367_s1 = inlined_call_operand.vmem [shape: f32[288,128], index: 1, kind: input, shape index: {}]   ;;  %s2368_s2 = inlined_call_operand.vmem [shape: f32[1,128], index: 2, kind: input, shape index: {}]   ;;  %s2369_s3 = inlined_call_operand.vmem [shape: f32[384,64], index: 3, kind: input, shape index: {}]   ;;  %s2370_s4 = inlined_call_operand.vmem [shape: f32[1,64], index: 4, kind: input, shape index: {}]   ;;  %s2371_s5 = inlined_call_operand.vmem [shape: f32[192,64], index: 5, kind: input, shape index: {}]   ;;  %s2372_s6 = inlined_call_operand.vmem [shape: f32[1,64], index: 6, kind: input, shape index: {}]   ;;  %s2373_s7 = inlined_call_operand.vmem [shape: f32[192,64], index: 7, kind: input, shape index: {}]   ;;  %s2374_s8 = inlined_call_operand.vmem [shape: f32[1,64], index: 8, kind: input, shape index: {}]   ;;  %s2375_s9 = inlined_call_operand.vmem [shape: f32[2,64,10], index: 9, kind: input, shape index: {}]   ;;  %s2376_s10 = inlined_call_operand.vmem [shape: f32[1,10], index: 10, kind: input, shape index: {}]   ;;  %s2377_s11 = inlined_call_operand.hbm [shape: f32[2,1,10], index: 11, kind: output, shape index: {}]  }
   0x1   :  { %18 = vsyncpa [#allocation6 + $0x1], 0  ;;  %s1697_s17 = smov 0   ;;  %s1699_s18 = smov 0  }
   0x2   :  { %s1701_s19 = smov 0   ;;  %s1703_s20 = smov 0  }
   0x3 LB: > { %2381 = sst [smem:[#allocation8_spill]] %s1626_s19  ;;  %s1718_s21 = sadd.s32 4294967295, %s1630_s20   ;;  %s1630_s20 = sphi %s1703_s20, %s2386_s20   ;;  %s1626_s19 = sphi %s1701_s19, %s2388_s19   ;;  %s1622_s18 = sphi %s1699_s18, %s2390_s18   ;;  %s1618_s17 = sphi %s1697_s17, %s2389_s17  }
   0x4   : > { %s1296_s22 = sadd.s32 4294967294, %s1630_s20   ;;  %s1722_s23 = sadd.s32 1, %s1630_s20  }
   0x5   : > { %2382 = sst [smem:[#allocation9_spill]] %s1722_s23  ;;  %s267_s24 = sadd.s32 1, %s1626_s19 }
   0x6   : > { %s264_s25 = ssub.s32 %s1630_s20, %s1722_s23  ;;  %p277_p0 = scmp.ne.s32.totalorder %s1626_s19, %s1622_s18 }
   0x7   : > { %p265_p1 = scmp.eq.s32.totalorder %s264_s25, 0  ;;  %p278_p2 = scmp.eq.s32.totalorder %s1718_s21, 1 }
   0x8   : > { %p283_p3 = scmp.ne.s32.totalorder %s1622_s18, %s1618_s17  ;;  %p284_p4 = scmp.eq.s32.totalorder %s1296_s22, 1 }
   0x9   : > { %s1733_s26 = scalar_select %p265_p1, %s1626_s19, %s267_s24  }
   0xa   : > { %p1735_p5 = por %p278_p2, %p277_p0  ;;  %p1739_p6 = por %p284_p4, %p283_p3 }
   0xb   : > { %2383 = sst [smem:[#allocation10_spill]] %s1733_s26  ;;  %p1299_p7 = scmp.ge.s32.totalorder %s1630_s20, 1 }
   0xc   : > { %p340_p8 = scmp.lt.s32.totalorder %s1630_s20, 3 }
   0xe   : > { %p341_p9 = pnand %p1299_p7, %p340_p8 }
   0xf   : > { %p379_p10 = scmp.lt.s32.totalorder (!%p341_p9), %s1718_s21, 1  ;;  %s1632_s26 = smov (!%p341_p9), 96  }
  0x10   : > { %344 = sbr.rel (%p341_p9) target bundleno = 1434 (0x59a), region = 64  ;;  %s1633_s14 = smov (!%p341_p9), 64  }
  0x11   : > { %s377_s22 = sand.u32 (!%p341_p9), 1, %s1622_s18   ;;  %s1325_s25 = sshll.u32 (!%p341_p9), %s1718_s21, 4 }
  0x12   : > { %s378_s19 = scalar_lea.vmem (!%p341_p9), [#allocation5], %s377_s22 }
  0x13   : > { %s1241_s23 = sshll.u32 (!%p341_p9), %s378_s19, 4  ;;  %s1242_s23 = int_to_ptr.vmem [resolvable:$true] %s1241_s23 }
  0x14   : > { %s1570_s13 = scalar_lea.vmem (!%p341_p9), %s1242_s23, 16 }
  0x15   : > { %v451_v0 = vld [vmem:[%s2367_s1 + $0xf8] sm:$0xff]  ;;  %v450_v2 = vld [vmem:[%s2367_s1 + $0xf0] sm:$0xff]  ;;  %s380_s24 = scalar_select %p379_p10, %s1718_s21, 1  ;;  %v449_v4 = vld [vmem:[%s2367_s1 + $0xe8] sm:$0xff]  ;;  %vm393_vm0 = vcmask 1040384   ;;  %v1634_v44 = vmov 0.0  }
  0x16   : > { %v435_v1 = vld [vmem:[%s2367_s1 + $0x78] sm:$0xff]  ;;  %1329 = vmatprep.subr.mxu0 %v451_v0  ;;  %v434_v3 = vld [vmem:[%s2367_s1 + $0x70] sm:$0xff]  ;;  %v433_v5 = vld [vmem:[%s2367_s1 + $0x68] sm:$0xff]  ;;  %vm463_vm1 = vcmask 261120   ;;  %vm417_vm2 = vcmask 523264   ;;  %vm414_vm3 = vcmask 785408   ;;  %p1571_p11 = scmp.ne.s32.totalorder %s1242_s23, %s1570_s13 }
  0x17   : > { %1330 = vmatpush3.msra.mxu0 %v435_v1  ;;  %s1328_s12 = sshll.u32 %s380_s24, 5  ;;  %v448_v6 = vld [vmem:[%s2367_s1 + $0xe0] sm:$0xff]  ;;  %v447_v13 = vld [vmem:[%s2367_s1 + $0xd8] sm:$0xff]  ;;  %v446_v16 = vld [vmem:[%s2367_s1 + $0xd0] sm:$0xff]  ;;  %vm1635_vm4 = vmmov 0   ;;  %vm942_vm6 = vcmask 519168  }
  0x18   : > { %1331 = vmatprep.subr.mxu0 %v450_v2  ;;  %s383_s15 = scalar_lea.vmem %s2366_s0, %s1328_s12  ;;  %v432_v7 = vld [vmem:[%s2367_s1 + $0x60] sm:$0xff]  ;;  %v431_v15 = vld [vmem:[%s2367_s1 + $0x58] sm:$0xff]  ;;  %v430_v19 = vld [vmem:[%s2367_s1 + $0x50] sm:$0xff]  ;;  %vm1226_vm7 = vcmask 73728   ;;  %s1229_s12 = scalar_lea.sflag [#allocation6], %s377_s22 }
  0x19   : > { %1332 = vmatpush3.msra.mxu0 %v434_v3  ;;  %v1302_v8 = vld [vmem:[%s383_s15 + $0x10] ss:$2 sm:$0xff]  ;;  %v384_v9 = vld [vmem:[%s383_s15] ss:$2 sm:$0xff]  ;;  %v1304_v10 = vld [vmem:[%s383_s15 + $0x11] ss:$2 sm:$0xff]  ;;  %p1572_p12 = pnand %p1571_p11, %p1735_p5 }
  0x1a   : > { %1333 = vmatprep.subr.mxu0 %v449_v4  ;;  %404 = vrot.lane.b32.xlu1 %v1302_v8, %s1632_s26  ;;  %v395_v11 = vrot.slane %v1304_v10, 7  ;;  %v1774_v12 = vld [vmem:[%s383_s15 + $0x1] ss:$2 sm:$0xff]  ;;  %v455_v17 = vld [vmem:[%s2367_s1 + $0x118] sm:$0xff]  ;;  %v454_v20 = vld [vmem:[%s2367_s1 + $0x110] sm:$0xff]  ;;  %s1636_s21 = smov [#allocation5]  }
  0x1b   : > { %1334 = vmatpush3.msra.mxu0 %v433_v5  ;;  %402 = vrot.lane.b32.xlu0 %v384_v9, %s1632_s26  ;;  %v394_v14 = vrot.slane %v1774_v12, 7  ;;  %v445_v21 = vld [vmem:[%s2367_s1 + $0xc8] sm:$0xff]  ;;  %v444_v24 = vld [vmem:[%s2367_s1 + $0xc0] sm:$0xff]  ;;  %v443_v27 = vld [vmem:[%s2367_s1 + $0xb8] sm:$0xff]  ;;  %p1573_p13 = pneg %p1572_p12  ;;  %s1574_s15 = sshll.u32 %s1636_s21, 4  ;;  %s1575_s15 = int_to_ptr.vmem [resolvable:$false] %s1574_s15 }
  0x1c   : > { %1335 = vmatprep.subr.mxu0 %v448_v6  ;;  %1443 = vmatprep.subr.mxu1 %v455_v17  ;;  %v429_v22 = vld [vmem:[%s2367_s1 + $0x48] sm:$0xff]  ;;  %v428_v25 = vld [vmem:[%s2367_s1 + $0x40] sm:$0xff]  ;;  %v427_v28 = vld [vmem:[%s2367_s1 + $0x38] sm:$0xff]  ;;  %s1576_s16 = scalar_lea.vmem %s1575_s15, 32  ;;  %p1577_p0 = scmp.lt.s32.totalorder %s1242_s23, %s1575_s15 }
  0x1d   : > { %1336 = vmatpush3.msra.mxu0 %v432_v7  ;;  %v1792_v18 = vsel %vm393_vm0, %v394_v14, %v395_v11  ;;  %1444 = vmatpush3.msra.mxu1 %v455_v17  ;;  %v453_v23 = vld [vmem:[%s2367_s1 + $0x108] sm:$0xff]  ;;  %v452_v26 = vld [vmem:[%s2367_s1 + $0x100] sm:$0xff]  ;;  %v660_v29 = vld [vmem:[%s2369_s3 + $0xf8] sm:$0xff]  ;;  %v399_v47 = vsel %vm393_vm0, 0.0, %v394_v14  ;;  %p1578_p1 = scmp.lt.s32.totalorder %s1576_s16, %s1570_s13 }
  0x1e   : > { %1337 = vmatprep.subr.mxu0 %v447_v13  ;;  %410 = vrot.lane.b32.xlu1 %v1304_v10, %s1633_s14  ;;  %v442_v30 = vld [vmem:[%s2367_s1 + $0xb0] sm:$0xff]  ;;  %v441_v32 = vld [vmem:[%s2367_s1 + $0xa8] sm:$0xff]  ;;  %v440_v34 = vld [vmem:[%s2367_s1 + $0xa0] sm:$0xff] }
  0x1f   : > { %408 = vrot.lane.b32.xlu0 %v1774_v12, %s1633_s14  ;;  %1338 = vmatpush3.msra.mxu0 %v431_v15  ;;  %v426_v31 = vld [vmem:[%s2367_s1 + $0x30] sm:$0xff]  ;;  %v425_v33 = vld [vmem:[%s2367_s1 + $0x28] sm:$0xff]  ;;  %v424_v35 = vld [vmem:[%s2367_s1 + $0x20] sm:$0xff]  ;;  %p1579_p2 = por %p1578_p1, %p1577_p0 }
  0x20   : > { %1339 = vmatprep.subr.mxu0 %v446_v16  ;;  %1445 = vmatprep.subr.mxu1 %v454_v20  ;;  %v439_v36 = vld [vmem:[%s2367_s1 + $0x98] sm:$0xff]  ;;  %v438_v38 = vld [vmem:[%s2367_s1 + $0x90] sm:$0xff]  ;;  %v437_v40 = vld [vmem:[%s2367_s1 + $0x88] sm:$0xff] }
  0x21   : > { %1340 = vmatpush3.msra.mxu0 %v430_v19  ;;  %1446 = vmatpush3.msra.mxu1 %v454_v20  ;;  %v423_v37 = vld [vmem:[%s2367_s1 + $0x18] sm:$0xff]  ;;  %v422_v39 = vld [vmem:[%s2367_s1 + $0x10] sm:$0xff]  ;;  %v421_v41 = vld [vmem:[%s2367_s1 + $0x8] sm:$0xff]  ;;  %p1580_p3 = pnand %p1579_p2, %p1573_p13 }
  0x22   : > { %1341 = vmatprep.subr.mxu0 %v445_v21  ;;  %1447 = vmatprep.subr.mxu1 %v453_v23  ;;  %v436_v42 = vld [vmem:[%s2367_s1 + $0x80] sm:$0xff]  ;;  %v644_v50 = vld [vmem:[%s2369_s3 + $0x78] sm:$0xff]  ;;  %v659_v54 = vld [vmem:[%s2369_s3 + $0xf0] sm:$0xff] }
  0x23   : > { %1342 = vmatpush3.msra.mxu0 %v429_v22  ;;  %1448 = vmatpush3.msra.mxu1 %v453_v23  ;;  %v420_v43 = vld [vmem:[%s2367_s1] sm:$0xff]  ;;  %v676_v52 = vld [vmem:[%s2369_s3 + $0x178] sm:$0xff]  ;;  %v675_v56 = vld [vmem:[%s2369_s3 + $0x170] sm:$0xff] }
  0x24   : > { %1343 = vmatprep.subr.mxu0 %v444_v24  ;;  %1449 = vmatprep.subr.mxu1 %v452_v26  ;;  %v643_v57 = vld [vmem:[%s2369_s3 + $0x70] sm:$0xff]  ;;  %v674_v58 = vld [vmem:[%s2369_s3 + $0x168] sm:$0xff]  ;;  %v673_v62 = vld [vmem:[%s2369_s3 + $0x160] sm:$0xff] }
  0x25   : > { %1344 = vmatpush3.msra.mxu0 %v428_v25  ;;  %1450 = vmatpush3.msra.mxu1 %v452_v26  ;;  %v658_v59 = vld [vmem:[%s2369_s3 + $0xe8] sm:$0xff]  ;;  %v657_v63 = vld [vmem:[%s2369_s3 + $0xe0] sm:$0xff]  ;;  %v672_v1 = vld [vmem:[%s2369_s3 + $0x158] sm:$0xff] }
  0x26   : > { %1345 = vmatprep.subr.mxu0 %v443_v27  ;;  %1373 = vmatprep.subr.mxu1 %v660_v29  ;;  %v642_v61 = vld [vmem:[%s2369_s3 + $0x68] sm:$0xff]  ;;  %v641_v0 = vld [vmem:[%s2369_s3 + $0x60] sm:$0xff]  ;;  %v656_v2 = vld [vmem:[%s2369_s3 + $0xd8] sm:$0xff] }
  0x27   : > { %1346 = vmatpush3.msra.mxu0 %v427_v28  ;;  %v640_v3 = vld [vmem:[%s2369_s3 + $0x58] sm:$0xff]  ;;  %v671_v4 = vld [vmem:[%s2369_s3 + $0x150] sm:$0xff]  ;;  %v670_v7 = vld [vmem:[%s2369_s3 + $0x148] sm:$0xff] }
  0x28   : > { %1347 = vmatprep.subr.mxu0 %v442_v30  ;;  %v655_v5 = vld [vmem:[%s2369_s3 + $0xd0] sm:$0xff]  ;;  %v654_v8 = vld [vmem:[%s2369_s3 + $0xc8] sm:$0xff]  ;;  %v669_v10 = vld [vmem:[%s2369_s3 + $0x140] sm:$0xff] }
  0x29   : > { %1348 = vmatpush3.msra.mxu0 %v426_v31  ;;  %v639_v6 = vld [vmem:[%s2369_s3 + $0x50] sm:$0xff]  ;;  %v638_v9 = vld [vmem:[%s2369_s3 + $0x48] sm:$0xff]  ;;  %v653_v11 = vld [vmem:[%s2369_s3 + $0xc0] sm:$0xff] }
  0x2a   : > { %1349 = vmatprep.subr.mxu0 %v441_v32  ;;  %v637_v12 = vld [vmem:[%s2369_s3 + $0x40] sm:$0xff]  ;;  %v668_v13 = vld [vmem:[%s2369_s3 + $0x138] sm:$0xff]  ;;  %v667_v16 = vld [vmem:[%s2369_s3 + $0x130] sm:$0xff] }
  0x2b   : > { %1350 = vmatpush3.msra.mxu0 %v425_v33  ;;  %v652_v14 = vld [vmem:[%s2369_s3 + $0xb8] sm:$0xff]  ;;  %v651_v17 = vld [vmem:[%s2369_s3 + $0xb0] sm:$0xff]  ;;  %v666_v19 = vld [vmem:[%s2369_s3 + $0x128] sm:$0xff] }
  0x2c   : > { %1351 = vmatprep.subr.mxu0 %v440_v34  ;;  %v636_v15 = vld [vmem:[%s2369_s3 + $0x38] sm:$0xff]  ;;  %v650_v20 = vld [vmem:[%s2369_s3 + $0xa8] sm:$0xff]  ;;  %v665_v22 = vld [vmem:[%s2369_s3 + $0x120] sm:$0xff] }
  0x2d   : > { %1352 = vmatpush3.msra.mxu0 %v424_v35  ;;  %v634_v21 = vld [vmem:[%s2369_s3 + $0x28] sm:$0xff]  ;;  %v649_v23 = vld [vmem:[%s2369_s3 + $0xa0] sm:$0xff]  ;;  %v664_v25 = vld [vmem:[%s2369_s3 + $0x118] sm:$0xff] }
  0x2e   : > { %1353 = vmatprep.subr.mxu0 %v439_v36  ;;  %v633_v24 = vld [vmem:[%s2369_s3 + $0x20] sm:$0xff]  ;;  %v648_v26 = vld [vmem:[%s2369_s3 + $0x98] sm:$0xff]  ;;  %v663_v28 = vld [vmem:[%s2369_s3 + $0x110] sm:$0xff] }
  0x2f   : > { %1354 = vmatpush3.msra.mxu0 %v423_v37  ;;  %v632_v27 = vld [vmem:[%s2369_s3 + $0x18] sm:$0xff]  ;;  %v647_v29 = vld [vmem:[%s2369_s3 + $0x90] sm:$0xff]  ;;  %v662_v31 = vld [vmem:[%s2369_s3 + $0x108] sm:$0xff] }
  0x30   : > { %1355 = vmatprep.subr.mxu0 %v438_v38  ;;  %v631_v30 = vld [vmem:[%s2369_s3 + $0x10] sm:$0xff]  ;;  %v646_v32 = vld [vmem:[%s2369_s3 + $0x88] sm:$0xff]  ;;  %v661_v34 = vld [vmem:[%s2369_s3 + $0x100] sm:$0xff] }
  0x31   : > { %1356 = vmatpush3.msra.mxu0 %v422_v39  ;;  %v630_v33 = vld [vmem:[%s2369_s3 + $0x8] sm:$0xff]  ;;  %v645_v35 = vld [vmem:[%s2369_s3 + $0x80] sm:$0xff]  ;;  %vm1309_vm5 = vmneg %vm393_vm0 }
  0x32   : > { %1357 = vmatprep.subr.mxu0 %v437_v40  ;;  %v629_v36 = vld [vmem:[%s2369_s3] sm:$0xff] }
  0x33   : > { %1358 = vmatpush3.msra.mxu0 %v421_v41  ;;  %v1305_v40 = vld [vmem:[%s2368_s2] ss:$0 sm:$0xff] }
  0x34   : > { %1359 = vmatprep.subr.mxu0 %v436_v42 }
  0x35   : > { %1360 = vmatpush3.msra.mxu0 %v420_v43 }
  0x36   : > { %1454 = vmatprep.subr.mxu0 %v1634_v44 }
  0x8c   : > { %v405_v45 = vpop.permute.xlu1 %404 }
  0x8d   : > { %v403_v46 = vpop.permute.xlu0 %402  ;;  %v416_v60 = vsel %vm414_vm3, %v1792_v18, %v405_v45  ;;  %v635_v18 = vld [vmem:[%s2369_s3 + $0x30] sm:$0xff] }
  0x8e   : > { %v415_v53 = vsel %vm414_vm3, %v399_v47, %v403_v46 }
  0x90   : > { %v411_v48 = vpop.permute.xlu1 %410 }
  0x91   : > { %v409_v49 = vpop.permute.xlu0 %408  ;;  %v419_v55 = vsel %vm417_vm2, %v405_v45, %v411_v48 }
  0x92   : > { %1451 = vmatprep.mubr.msk.f32.mxu1 %vm463_vm1, %v409_v49  ;;  %v418_v51 = vsel %vm417_vm2, %v403_v46, %v409_v49 }
  0x93   : > { %532 = vmatprep.mubr.f32.mxu0 %v418_v51  ;;  %1452 = vmatmul.mubr.msk.f32.vlgmr.msra.gmra.mxu1 %vm463_vm1, %v411_v48 }
  0x94   : > { %533 = vmatmul.mubr.f32.vlgmr.msra.gmra.mxu0 %v415_v53  ;;  %1374 = vmatpush3.msra.mxu1 %v644_v50 }
  0x95   : > { %537 = vmatprep.mubr.f32.mxu0 %v419_v55  ;;  %1455 = vmatpush3.msra.mxu0 %v676_v52 }
  0x96   : > { %1456 = vmatprep.subr.mxu0 %v1634_v44  ;;  %1375 = vmatprep.subr.mxu1 %v659_v54 }
  0x97   : > { %1457 = vmatpush3.msra.mxu0 %v675_v56  ;;  %1376 = vmatpush3.msra.mxu1 %v643_v57  ;;  %v853_v56 = vld [vmem:[%s2371_s5 + $0x78] sm:$0xff]  ;;  %v852_v57 = vld [vmem:[%s2371_s5 + $0x70] sm:$0xff] }
  0x98   : > { %538 = vmatmul.mubr.f32.gmra.mxu0 %v416_v60  ;;  %1458 = vmatprep.subr.mxu0 %v1634_v44  ;;  %v849_v60 = vld [vmem:[%s2371_s5 + $0x58] sm:$0xff] }
  0x99   : > { %1459 = vmatpush3.msra.mxu0 %v674_v58  ;;  %1377 = vmatprep.subr.mxu1 %v658_v59  ;;  %v851_v58 = vld [vmem:[%s2371_s5 + $0x68] sm:$0xff]  ;;  %v850_v59 = vld [vmem:[%s2371_s5 + $0x60] sm:$0xff] }
  0x9a   : > { %1460 = vmatprep.subr.mxu0 %v1634_v44  ;;  %1378 = vmatpush3.msra.mxu1 %v642_v61  ;;  %v848_v61 = vld [vmem:[%s2371_s5 + $0x50] sm:$0xff] }
  0x9b   : > { %1461 = vmatpush3.msra.mxu0 %v673_v62  ;;  %1379 = vmatprep.subr.mxu1 %v657_v63  ;;  %v847_v62 = vld [vmem:[%s2371_s5 + $0x48] sm:$0xff]  ;;  %v846_v63 = vld [vmem:[%s2371_s5 + $0x40] sm:$0xff] }
  0x9c   : > { %1462 = vmatprep.subr.mxu0 %v1634_v44  ;;  %1380 = vmatpush3.msra.mxu1 %v641_v0  ;;  %v845_v0 = vld [vmem:[%s2371_s5 + $0x38] sm:$0xff] }
  0x9d   : > { %1463 = vmatpush3.msra.mxu0 %v672_v1  ;;  %1381 = vmatprep.subr.mxu1 %v656_v2  ;;  %v844_v1 = vld [vmem:[%s2371_s5 + $0x30] sm:$0xff]  ;;  %v843_v2 = vld [vmem:[%s2371_s5 + $0x28] sm:$0xff] }
  0x9e   : > { %1464 = vmatprep.subr.mxu0 %v1634_v44  ;;  %1382 = vmatpush3.msra.mxu1 %v640_v3  ;;  %v842_v3 = vld [vmem:[%s2371_s5 + $0x20] sm:$0xff] }
  0x9f   : > { %1465 = vmatpush3.msra.mxu0 %v671_v4  ;;  %1383 = vmatprep.subr.mxu1 %v655_v5  ;;  %v841_v4 = vld [vmem:[%s2371_s5 + $0x18] sm:$0xff]  ;;  %v840_v5 = vld [vmem:[%s2371_s5 + $0x10] sm:$0xff] }
  0xa0   : > { %1466 = vmatprep.subr.mxu0 %v1634_v44  ;;  %1384 = vmatpush3.msra.mxu1 %v639_v6  ;;  %v839_v6 = vld [vmem:[%s2371_s5 + $0x8] sm:$0xff] }
  0xa1   : > { %1467 = vmatpush3.msra.mxu0 %v670_v7  ;;  %1385 = vmatprep.subr.mxu1 %v654_v8  ;;  %v838_v7 = vld [vmem:[%s2371_s5] sm:$0xff]  ;;  %v861_v8 = vld [vmem:[%s2371_s5 + $0xb8] sm:$0xff] }
  0xa2   : > { %1468 = vmatprep.subr.mxu0 %v1634_v44  ;;  %1386 = vmatpush3.msra.mxu1 %v638_v9  ;;  %v860_v9 = vld [vmem:[%s2371_s5 + $0xb0] sm:$0xff] }
  0xa3   : > { %1469 = vmatpush3.msra.mxu0 %v669_v10  ;;  %1387 = vmatprep.subr.mxu1 %v653_v11  ;;  %v859_v10 = vld [vmem:[%s2371_s5 + $0xa8] sm:$0xff]  ;;  %v858_v11 = vld [vmem:[%s2371_s5 + $0xa0] sm:$0xff] }
  0xa4   : > { %1470 = vmatprep.subr.mxu0 %v1634_v44  ;;  %1388 = vmatpush3.msra.mxu1 %v637_v12  ;;  %v857_v12 = vld [vmem:[%s2371_s5 + $0x98] sm:$0xff] }
  0xa5   : > { %1471 = vmatpush3.msra.mxu0 %v668_v13  ;;  %1389 = vmatprep.subr.mxu1 %v652_v14  ;;  %v856_v13 = vld [vmem:[%s2371_s5 + $0x90] sm:$0xff]  ;;  %v855_v14 = vld [vmem:[%s2371_s5 + $0x88] sm:$0xff] }
  0xa6   : > { %1472 = vmatprep.subr.mxu0 %v1634_v44  ;;  %1390 = vmatpush3.msra.mxu1 %v636_v15 }
  0xa7   : > { %1473 = vmatpush3.msra.mxu0 %v667_v16  ;;  %1391 = vmatprep.subr.mxu1 %v651_v17 }
  0xa8   : > { %1474 = vmatprep.subr.mxu0 %v1634_v44  ;;  %1392 = vmatpush3.msra.mxu1 %v635_v18  ;;  %v1308_v18 = vld [vmem:[%s2370_s4] ss:$0 sm:$0xff] }
  0xa9   : > { %1475 = vmatpush3.msra.mxu0 %v666_v19  ;;  %1393 = vmatprep.subr.mxu1 %v650_v20 }
  0xaa   : > { %1476 = vmatprep.subr.mxu0 %v1634_v44  ;;  %1394 = vmatpush3.msra.mxu1 %v634_v21 }
  0xab   : > { %1477 = vmatpush3.msra.mxu0 %v665_v22  ;;  %1395 = vmatprep.subr.mxu1 %v649_v23  ;;  %v854_v22 = vld [vmem:[%s2371_s5 + $0x80] sm:$0xff] }
  0xac   : > { %1478 = vmatprep.subr.mxu0 %v1634_v44  ;;  %1396 = vmatpush3.msra.mxu1 %v633_v24 }
  0xad   : > { %1479 = vmatpush3.msra.mxu0 %v664_v25  ;;  %1397 = vmatprep.subr.mxu1 %v648_v26 }
  0xae   : > { %1480 = vmatprep.subr.mxu0 %v1634_v44  ;;  %1398 = vmatpush3.msra.mxu1 %v632_v27 }
  0xaf   : > { %1481 = vmatpush3.msra.mxu0 %v663_v28  ;;  %1399 = vmatprep.subr.mxu1 %v647_v29 }
  0xb0   : > { %1482 = vmatprep.subr.mxu0 %v1634_v44  ;;  %1400 = vmatpush3.msra.mxu1 %v631_v30 }
  0xb1   : > { %1483 = vmatpush3.msra.mxu0 %v662_v31  ;;  %1401 = vmatprep.subr.mxu1 %v646_v32  ;;  %v971_v31 = vld [vmem:[%s2373_s7 + $0x78] sm:$0xff]  ;;  %v970_v32 = vld [vmem:[%s2373_s7 + $0x70] sm:$0xff] }
  0xb2   : > { %1484 = vmatprep.subr.mxu0 %v1634_v44  ;;  %1402 = vmatpush3.msra.mxu1 %v630_v33  ;;  %v969_v33 = vld [vmem:[%s2373_s7 + $0x68] sm:$0xff] }
  0xb3   : > { %1485 = vmatpush3.msra.mxu0 %v661_v34  ;;  %1486 = vmatprep.mubr.msk.f32.mxu0 %vm1635_vm4, %v1634_v44  ;;  %v968_v34 = vld [vmem:[%s2373_s7 + $0x60] sm:$0xff] }
  0xb4   : > { %1403 = vmatprep.subr.mxu1 %v645_v35  ;;  %989 = vmatprep.subr.mxu0 %v1634_v44  ;;  %v967_v35 = vld [vmem:[%s2373_s7 + $0x58] sm:$0xff] }
  0xb5   : > { %1404 = vmatpush3.msra.mxu1 %v629_v36  ;;  %v966_v36 = vld [vmem:[%s2373_s7 + $0x50] sm:$0xff] }
  0xb6   : > { %871 = vmatprep.subr.mxu1 %v1634_v44 }
 0x153   : > { %v1453_v38 = vpop.f32.mrf.mxu1 }
 0x154   : > { %v1361_v37 = vpop.f32.mrf.mxu0 }
 0x155   : > { %v609_v45 = vpop.f32.mrf.mxu1 }
 0x156   : > { %v1362_v39 = vpop.f32.mrf.mxu0 }
 0x157   : > { %v1363_v41 = vadd.f32 %v1362_v39, %v1361_v37  ;;  %v965_v37 = vld [vmem:[%s2373_s7 + $0x48] sm:$0xff]  ;;  %v963_v39 = vld [vmem:[%s2373_s7 + $0x38] sm:$0xff] }
 0x158   : > { %v1364_v42 = vpop.f32.mrf.mxu0 }
 0x159   : > { %v535_v43 = vadd.f32 %v1363_v41, %v1305_v40  ;;  %v961_v41 = vld [vmem:[%s2373_s7 + $0x28] sm:$0xff] }
 0x15a   : > { %v1365_v46 = vpop.f32.mrf.mxu0 }
 0x15b   : > { %v610_v47 = vadd.f32 %v609_v45, %v535_v43  ;;  %v1366_v48 = vadd.f32 %v1365_v46, %v1364_v42  ;;  %v960_v42 = vld [vmem:[%s2373_s7 + $0x20] sm:$0xff]  ;;  %v959_v43 = vld [vmem:[%s2373_s7 + $0x18] sm:$0xff]  ;;  %v958_v45 = vld [vmem:[%s2373_s7 + $0x10] sm:$0xff] }
 0x15c   : > { %v957_v46 = vld [vmem:[%s2373_s7 + $0x8] sm:$0xff] }
 0x15d   : > { %v618_v49 = vmax.f32 %v610_v47, 0.0  ;;  %v540_v50 = vadd.f32 %v1366_v48, %v1305_v40  ;;  %v962_v40 = vld [vmem:[%s2373_s7 + $0x30] sm:$0xff]  ;;  %v956_v47 = vld [vmem:[%s2373_s7] sm:$0xff]  ;;  %v979_v48 = vld [vmem:[%s2373_s7 + $0xb8] sm:$0xff] }
 0x15f   : > { %620 = vst [vmem:[#allocation2] sm:$0xff] %v618_v49  ;;  %v615_v51 = vadd.f32 %v1453_v38, %v540_v50  ;;  %v964_v38 = vld [vmem:[%s2373_s7 + $0x40] sm:$0xff]  ;;  %v978_v49 = vld [vmem:[%s2373_s7 + $0xb0] sm:$0xff]  ;;  %v977_v50 = vld [vmem:[%s2373_s7 + $0xa8] sm:$0xff] }
 0x161   : > { %v619_v52 = vmax.f32 %v615_v51, 0.0  ;;  %v976_v51 = vld [vmem:[%s2373_s7 + $0xa0] sm:$0xff] }
 0x163   : > { %621 = vst [vmem:[#allocation2 + $0x8] sm:$0xff] %v619_v52  ;;  %v975_v52 = vld [vmem:[%s2373_s7 + $0x98] sm:$0xff] }
 0x16a   : > { %v622_v53 = vld [vmem:[#allocation2] ss:$2 sm:$0xff]  ;;  %v624_v54 = vld [vmem:[#allocation2 + $0x1] ss:$2 sm:$0xff] }
 0x16b   : > { %748 = vmatprep.mubr.f32.mxu1 %v622_v53  ;;  %v626_v55 = vrot.slane %v624_v54, 7  ;;  %1487 = vmatmul.mubr.f32.vlgmr.msra.gmra.mxu0 %v624_v54  ;;  %v974_v53 = vld [vmem:[%s2373_s7 + $0x90] sm:$0xff]  ;;  %v973_v54 = vld [vmem:[%s2373_s7 + $0x88] sm:$0xff] }
 0x16c   : > { %990 = vmatpush1.msra.mxu0 %v971_v31 }
 0x16d   : > { %1310 = vmatmul.mubr.msk.f32.vlgmr.msra.gmra.mxu1 %vm1309_vm5, %v626_v55  ;;  %991 = vmatprep.subr.mxu0 %v1634_v44  ;;  %v1311_v55 = vld [vmem:[%s2372_s6] ss:$0 sm:$0xff] }
 0x16e   : > { %872 = vmatpush1.msra.mxu1 %v853_v56  ;;  %992 = vmatpush1.msra.mxu0 %v970_v32  ;;  %v972_v56 = vld [vmem:[%s2373_s7 + $0x80] sm:$0xff] }
 0x16f   : > { %873 = vmatprep.subr.mxu1 %v1634_v44  ;;  %993 = vmatprep.subr.mxu0 %v1634_v44 }
 0x170   : > { %874 = vmatpush1.msra.mxu1 %v852_v57  ;;  %994 = vmatpush1.msra.mxu0 %v969_v33 }
 0x171   : > { %875 = vmatprep.subr.mxu1 %v1634_v44  ;;  %995 = vmatprep.subr.mxu0 %v1634_v44 }
 0x172   : > { %876 = vmatpush1.msra.mxu1 %v851_v58  ;;  %996 = vmatpush1.msra.mxu0 %v968_v34 }
 0x173   : > { %877 = vmatprep.subr.mxu1 %v1634_v44  ;;  %997 = vmatprep.subr.mxu0 %v1634_v44 }
 0x174   : > { %878 = vmatpush1.msra.mxu1 %v850_v59  ;;  %998 = vmatpush1.msra.mxu0 %v967_v35  ;;  %v1068_v59 = vld [vmem:[%s2375_s9 + $0x38] sm:$0xff] }
 0x175   : > { %879 = vmatprep.subr.mxu1 %v1634_v44  ;;  %999 = vmatprep.subr.mxu0 %v1634_v44 }
 0x176   : > { %880 = vmatpush1.msra.mxu1 %v849_v60  ;;  %1000 = vmatpush1.msra.mxu0 %v966_v36  ;;  %v1067_v60 = vld [vmem:[%s2375_s9 + $0x30] sm:$0xff] }
 0x177   : > { %881 = vmatprep.subr.mxu1 %v1634_v44  ;;  %1001 = vmatprep.subr.mxu0 %v1634_v44 }
 0x178   : > { %882 = vmatpush1.msra.mxu1 %v848_v61  ;;  %1002 = vmatpush1.msra.mxu0 %v965_v37 }
 0x179   : > { %883 = vmatprep.subr.mxu1 %v1634_v44  ;;  %1003 = vmatprep.subr.mxu0 %v1634_v44 }
 0x17a   : > { %884 = vmatpush1.msra.mxu1 %v847_v62  ;;  %1004 = vmatpush1.msra.mxu0 %v964_v38 }
 0x17b   : > { %885 = vmatprep.subr.mxu1 %v1634_v44  ;;  %1005 = vmatprep.subr.mxu0 %v1634_v44 }
 0x17c   : > { %886 = vmatpush1.msra.mxu1 %v846_v63  ;;  %1006 = vmatpush1.msra.mxu0 %v963_v39  ;;  %v1066_v63 = vld [vmem:[%s2375_s9 + $0x28] sm:$0xff] }
 0x17d   : > { %887 = vmatprep.subr.mxu1 %v1634_v44  ;;  %1007 = vmatprep.subr.mxu0 %v1634_v44 }
 0x17e   : > { %888 = vmatpush1.msra.mxu1 %v845_v0  ;;  %1008 = vmatpush1.msra.mxu0 %v962_v40  ;;  %v1065_v0 = vld [vmem:[%s2375_s9 + $0x20] sm:$0xff] }
 0x17f   : > { %889 = vmatprep.subr.mxu1 %v1634_v44  ;;  %1009 = vmatprep.subr.mxu0 %v1634_v44 }
 0x180   : > { %890 = vmatpush1.msra.mxu1 %v844_v1  ;;  %1010 = vmatpush1.msra.mxu0 %v961_v41  ;;  %v1064_v1 = vld [vmem:[%s2375_s9 + $0x18] sm:$0xff] }
 0x181   : > { %891 = vmatprep.subr.mxu1 %v1634_v44  ;;  %1011 = vmatprep.subr.mxu0 %v1634_v44 }
 0x182   : > { %892 = vmatpush1.msra.mxu1 %v843_v2  ;;  %1012 = vmatpush1.msra.mxu0 %v960_v42  ;;  %v1063_v2 = vld [vmem:[%s2375_s9 + $0x10] sm:$0xff] }
 0x183   : > { %893 = vmatprep.subr.mxu1 %v1634_v44  ;;  %1013 = vmatprep.subr.mxu0 %v1634_v44 }
 0x184   : > { %894 = vmatpush1.msra.mxu1 %v842_v3  ;;  %1014 = vmatpush1.msra.mxu0 %v959_v43 }
 0x185   : > { %895 = vmatprep.subr.mxu1 %v1634_v44  ;;  %1015 = vmatprep.subr.mxu0 %v1634_v44 }
 0x186   : > { %896 = vmatpush1.msra.mxu1 %v841_v4  ;;  %1016 = vmatpush1.msra.mxu0 %v958_v45 }
 0x187   : > { %897 = vmatprep.subr.mxu1 %v1634_v44  ;;  %1017 = vmatprep.subr.mxu0 %v1634_v44 }
 0x188   : > { %898 = vmatpush1.msra.mxu1 %v840_v5  ;;  %1018 = vmatpush1.msra.mxu0 %v957_v46 }
 0x189   : > { %899 = vmatprep.subr.mxu1 %v1634_v44  ;;  %1019 = vmatprep.subr.mxu0 %v1634_v44 }
 0x18a   : > { %900 = vmatpush1.msra.mxu1 %v839_v6  ;;  %1020 = vmatpush1.msra.mxu0 %v956_v47 }
 0x18b   : > { %901 = vmatprep.subr.mxu1 %v1634_v44  ;;  %1037 = vmatprep.subr.mxu0 %v1634_v44 }
 0x18c   : > { %902 = vmatpush1.msra.mxu1 %v838_v7  ;;  %1038 = vmatpush2.msra.mxu0 %v979_v48 }
 0x18d   : > { %919 = vmatprep.subr.mxu1 %v1634_v44  ;;  %1039 = vmatprep.subr.mxu0 %v1634_v44 }
 0x18e   : > { %920 = vmatpush2.msra.mxu1 %v861_v8  ;;  %1040 = vmatpush2.msra.mxu0 %v978_v49 }
 0x18f   : > { %921 = vmatprep.subr.mxu1 %v1634_v44  ;;  %1041 = vmatprep.subr.mxu0 %v1634_v44 }
 0x190   : > { %922 = vmatpush2.msra.mxu1 %v860_v9  ;;  %1042 = vmatpush2.msra.mxu0 %v977_v50  ;;  %v1062_v9 = vld [vmem:[%s2375_s9 + $0x8] sm:$0xff] }
 0x191   : > { %923 = vmatprep.subr.mxu1 %v1634_v44  ;;  %1043 = vmatprep.subr.mxu0 %v1634_v44 }
 0x192   : > { %924 = vmatpush2.msra.mxu1 %v859_v10  ;;  %1044 = vmatpush2.msra.mxu0 %v976_v51  ;;  %v1061_v10 = vld [vmem:[%s2375_s9] sm:$0xff] }
 0x193   : > { %925 = vmatprep.subr.mxu1 %v1634_v44  ;;  %1045 = vmatprep.subr.mxu0 %v1634_v44 }
 0x194   : > { %926 = vmatpush2.msra.mxu1 %v858_v11  ;;  %1046 = vmatpush2.msra.mxu0 %v975_v52  ;;  %v1313_v11 = vld [vmem:[%s2374_s8] ss:$0 sm:$0xff] }
 0x195   : > { %927 = vmatprep.subr.mxu1 %v1634_v44  ;;  %1047 = vmatprep.subr.mxu0 %v1634_v44 }
 0x196   : > { %928 = vmatpush2.msra.mxu1 %v857_v12  ;;  %1048 = vmatpush2.msra.mxu0 %v974_v53 }
 0x197   : > { %929 = vmatprep.subr.mxu1 %v1634_v44  ;;  %1049 = vmatprep.subr.mxu0 %v1634_v44 }
 0x198   : > { %930 = vmatpush2.msra.mxu1 %v856_v13  ;;  %1050 = vmatpush2.msra.mxu0 %v973_v54 }
 0x199   : > { %931 = vmatprep.subr.mxu1 %v1634_v44  ;;  %1051 = vmatprep.subr.mxu0 %v1634_v44 }
 0x19a   : > { %932 = vmatpush2.msra.mxu1 %v855_v14  ;;  %1052 = vmatpush2.msra.mxu0 %v972_v56 }
 0x19b   : > { %933 = vmatprep.subr.mxu1 %v1634_v44 }
 0x19c   : > { %934 = vmatpush2.msra.mxu1 %v854_v22  ;;  %v1317_v22 = vld [vmem:[%s2375_s9 + $0x48] sm:$0xff] }
 0x19d   : > { %1489 = vmatprep.subr.mxu1 %v1634_v44 }
 0x22b   : > { %v820_v15 = vpop.f32.mrf.mxu0 }
 0x22d   : > { %v1405_v16 = vpop.f32.mrf.mxu1  ;;  %v1488_v17 = vpop.f32.mrf.mxu0 }
 0x22e   : > { %v1322_v17 = vld [vmem:[%s2375_s9 + $0x70] sm:$0xff] }
 0x22f   : > { %v1406_v19 = vpop.f32.mrf.mxu1 }
 0x230   : > { %v1407_v20 = vadd.f32 %v1406_v19, %v1405_v16  ;;  %v1323_v16 = vld [vmem:[%s2375_s9 + $0x78] sm:$0xff]  ;;  %v1320_v19 = vld [vmem:[%s2375_s9 + $0x60] sm:$0xff] }
 0x232   : > { %v751_v21 = vadd.f32 %v1407_v20, %v1308_v18  ;;  %v1321_v18 = vld [vmem:[%s2375_s9 + $0x68] sm:$0xff]  ;;  %v1319_v20 = vld [vmem:[%s2375_s9 + $0x58] sm:$0xff] }
 0x234   : > { %v821_v23 = vadd.f32 %v820_v15, %v751_v21  ;;  %v1318_v21 = vld [vmem:[%s2375_s9 + $0x50] sm:$0xff] }
 0x236   : > { %v824_v24 = vmax.f32 %v821_v23, 0.0  ;;  %v1316_v23 = vld [vmem:[%s2375_s9 + $0x40] sm:$0xff] }
 0x238   : > { %825 = vst.msk [vmem:[#allocation3] sm:$0xff] %vm417_vm2, %v824_v24 }
 0x23f   : > { %v828_v25 = vld [vmem:[#allocation3 + $0x1] ss:$2 sm:$0xf]  ;;  %v826_v26 = vld [vmem:[#allocation3] ss:$2 sm:$0xf] }
 0x240   : > { %1312 = vmatprep.mubr.msk.f32.mxu1 %vm417_vm2, %v828_v25  ;;  %834 = vrot.lane.b32.xlu0 %v826_v26, %s1633_s14  ;;  %v830_v27 = vrot.slane %v828_v25, 7 }
 0x242   : > { %v832_v28 = vsel %vm393_vm0, 0.0, %v830_v27  ;;  %v1060_v27 = vld [vmem:[%s2376_s10] sm:$0x1] }
 0x2b2   : > { %v835_v29 = vpop.permute.xlu0 %834 }
 0x2b3   : > { %v837_v30 = vsel %vm417_vm2, %v832_v28, %v835_v29 }
 0x2b4   : > { %936 = vmatmul.mubr.f32.vlgmr.msra.gmra.mxu1 %v837_v30 }
 0x2b5   : > { %1505 = vmatprep.mubr.msk.f32.mxu1 %vm1635_vm4, %v1634_v44  ;;  %1490 = vmatpush3.msra.mxu1 %v1068_v59 }
 0x2b6   : > { %1491 = vmatprep.subr.mxu1 %v1634_v44 }
 0x2b7   : > { %1492 = vmatpush3.msra.mxu1 %v1067_v60 }
 0x2b8   : > { %1493 = vmatprep.subr.mxu1 %v1634_v44 }
 0x2b9   : > { %1494 = vmatpush3.msra.mxu1 %v1066_v63 }
 0x2ba   : > { %1495 = vmatprep.subr.mxu1 %v1634_v44 }
 0x2bb   : > { %1496 = vmatpush3.msra.mxu1 %v1065_v0 }
 0x2bc   : > { %1497 = vmatprep.subr.mxu1 %v1634_v44 }
 0x2bd   : > { %1498 = vmatpush3.msra.mxu1 %v1064_v1 }
 0x2be   : > { %1499 = vmatprep.subr.mxu1 %v1634_v44 }
 0x2bf   : > { %1500 = vmatpush3.msra.mxu1 %v1063_v2 }
 0x2c0   : > { %1501 = vmatprep.subr.mxu1 %v1634_v44 }
 0x2c1   : > { %1502 = vmatpush3.msra.mxu1 %v1062_v9 }
 0x2c2   : > { %1503 = vmatprep.subr.mxu1 %v1634_v44 }
 0x2c3   : > { %1504 = vmatpush3.msra.mxu1 %v1061_v10 }
 0x2c4   : > { %1508 = vmatprep.subr.mxu1 %v1634_v44 }
 0x374   : > { %v937_v57 = vpop.f32.mrf.mxu1 }
 0x375   : > { %v938_v58 = vadd.f32 %v1311_v55, %v937_v57 }
 0x376   : > { %v939_v61 = vpop.f32.mrf.mxu1 }
 0x377   : > { %v941_v62 = vmax.f32 %v938_v58, 0.0 }
 0x379   : > { %943 = vst.msk [vmem:[#allocation4] sm:$0xf] %vm942_vm6, %v941_v62 }
 0x380   : > { %v946_v3 = vld [vmem:[#allocation4 + $0x1] ss:$2 sm:$0x3]  ;;  %v944_v4 = vld [vmem:[#allocation4] ss:$2 sm:$0x3] }
 0x381   : > { %1314 = vmatprep.mubr.msk.f32.mxu0 %vm417_vm2, %v946_v3  ;;  %952 = vrot.lane.b32.xlu1 %v944_v4, %s1633_s14  ;;  %v948_v5 = vrot.slane %v946_v3, 7  ;;  %s2331_s14 = scalar_lea.hbm %s2377_s11, %s1325_s25 }
 0x383   : > { %v950_v6 = vsel %vm393_vm0, 0.0, %v948_v5 }
 0x3f3   : > { %v953_v7 = vpop.permute.xlu1 %952 }
 0x3f4   : > { %v955_v8 = vsel %vm417_vm2, %v950_v6, %v953_v7 }
 0x3f5   : > { %1054 = vmatmul.mubr.f32.vlgmr.msra.gmra.mxu0 %v955_v8 }
 0x4b5   : > { %v1055_v12 = vpop.f32.mrf.mxu0 }
 0x4b6   : > { %v1056_v13 = vadd.f32 %v1313_v11, %v1055_v12 }
 0x4b7   : > { %v1057_v14 = vpop.f32.mrf.mxu0 }
 0x4b8   : > { %v1059_v15 = vmax.f32 %v1056_v13, 0.0 }
 0x4ba   : > { %1506 = vmatmul.mubr.msk.f32.vlgmr.msra.gmra.mxu1 %vm417_vm2, %v1059_v15  ;;  %v1152_v24 = vrot.slane %v1059_v15, 1 }
 0x4bb   : > { %1509 = vmatpush3.msra.mxu1 %v1323_v16  ;;  %1524 = vmatprep.mubr.msk.f32.mxu1 %vm1635_vm4, %v1634_v44 }
 0x4bc   : > { %1510 = vmatprep.subr.mxu1 %v1634_v44 }
 0x4bd   : > { %1511 = vmatpush3.msra.mxu1 %v1322_v17 }
 0x4be   : > { %1512 = vmatprep.subr.mxu1 %v1634_v44 }
 0x4bf   : > { %1513 = vmatpush3.msra.mxu1 %v1321_v18 }
 0x4c0   : > { %1514 = vmatprep.subr.mxu1 %v1634_v44 }
 0x4c1   : > { %1515 = vmatpush3.msra.mxu1 %v1320_v19 }
 0x4c2   : > { %1516 = vmatprep.subr.mxu1 %v1634_v44 }
 0x4c3   : > { %1517 = vmatpush3.msra.mxu1 %v1319_v20 }
 0x4c4   : > { %1518 = vmatprep.subr.mxu1 %v1634_v44 }
 0x4c5   : > { %1519 = vmatpush3.msra.mxu1 %v1318_v21 }
 0x4c6   : > { %1520 = vmatprep.subr.mxu1 %v1634_v44 }
 0x4c7   : > { %1521 = vmatpush3.msra.mxu1 %v1317_v22 }
 0x4c8   : > { %1522 = vmatprep.subr.mxu1 %v1634_v44 }
 0x4c9   : > { %1523 = vmatpush3.msra.mxu1 %v1316_v23 }
 0x4ca   : > { %1525 = vmatmul.mubr.msk.f32.vlgmr.msra.gmra.mxu1 %vm417_vm2, %v1152_v24 }
 0x57a   : > { %v1138_v25 = vpop.f32.mrf.mxu1 }
 0x57b   : > { %v1142_v28 = vadd.f32 %v1138_v25, %v1060_v27 }
 0x57c   : > { %v1507_v26 = vpop.f32.mrf.mxu1 }
 0x58a   : > { %v1221_v29 = vpop.f32.mrf.mxu1 }
 0x58b   : > { %v1225_v30 = vadd.f32 %v1221_v29, %v1142_v28 }
 0x58c   : > { %v1526_v44 = vpop.f32.mrf.mxu1 }
 0x58d   : > { %1227 = vst.msk [vmem:[%s378_s19] sm:$0x1] %vm1226_vm7, %v1225_v30 }
 0x58e   : > { %1583 = shalt.err (!%p1580_p3)
}
 0x58f   : > { %s1584_s26 = scalar_lea.hbm %s2331_s14, 16  ;;  %s1588_s25 = scalar_lea.hbm %s2377_s11, 32 }
 0x590   : > { %p1585_p4 = scmp.ne.s32.totalorder %s2331_s14, %s1584_s26  ;;  %p1589_p9 = scmp.lt.s32.totalorder %s2331_s14, %s2377_s11 }
 0x591   : > { %p1590_p10 = scmp.lt.s32.totalorder %s1588_s25, %s1584_s26 }
 0x592   : > { %p1586_p7 = pnand %p1585_p4, %p1735_p5 }
 0x593   : > { %p1591_p11 = por %p1590_p10, %p1589_p9 }
 0x594   : > { %p1587_p8 = pneg %p1586_p7 }
 0x596   : > { %p1592_p12 = pnand %p1591_p11, %p1587_p8 }
 0x598   : > { %1595 = shalt.err (!%p1592_p12)
}
 0x599   : > { %1527 = dma.vmem_to_hbm [thread:$0]  (%p1735_p5), %s1242_s23, 16, %s2331_s14, %s1229_s12  }
 0x59a PF: > { %p1533_p13 = scmp.ge.s32.totalorder %s1630_s20, 2  ;;  %s1253_s30 = sand.u32 1, %s1618_s17  }
 0x59b   : > { %s1254_s13 = scalar_lea.sflag [#allocation6], %s1253_s30 }
 0x59c   : > { %p1530_p0 = pnand %p1533_p13, %p1739_p6 }
 0x59e   : > { %p1531_p1 = pneg %p1530_p0 }
 0x5a0   : > { %1613 = dma.done.wait (%p1531_p1), %s1254_s13, 16  }
 0x5a1   : > { %1615 = vsyncadd (%p1531_p1), %s1254_s13, 4294967280  ;;  %s2386_s20 = sld [smem:[#allocation9_spill]]  ;;  %s2389_s17 = smov %s1622_s18 }
 0x5a2   : > { %s2387_s21 = sld [smem:[#allocation8_spill]] }
 0x5a3   : > { %s2388_s19 = sld [smem:[#allocation10_spill]] }
 0x5a7   : > { %p21_p2 = scmp.ge.s32.totalorder %s2386_s20, 4  }
 0x5a8   : > { %s2390_s18 = smov %s2387_s21 }
 0x5a9   :  { %23 = sbr.rel (!%p21_p2) target bundleno = 3 (0x3), region = 106 }
 0x5ae   :  { %1258 = vsyncpa [#allocation6], 1 }
 0x5af   :  { %1260 = vsyncpa [#allocation6 + $0x1], 1 }

</bundles_post_ra>
